<compile_context>
chip_gen: v6e
topology: v6e:2x2x1
jax: 0.10.0
libtpu: 0.0.40
codegen_flags: <defaults>
</compile_context>

<pallas_src>
import jax
import jax.numpy as jnp
from jax.scipy.linalg import block_diag
from jax.experimental import pallas as pl
from jax.experimental.pallas import tpu as pltpu


# ---------------------------------------------------------------- kernels ---

def _resblock_identity_kernel(x_ref, w1_ref, b1_ref, w2_ref, b2_ref, o_ref):
    """d_in == d_out:  out = x + W2 @ relu(W1 @ x + b1) + b2.

    x_ref / o_ref are (d, TN) lane-dense tiles of the packed (d, B*L) slab.
    """
    x = x_ref[...].astype(jnp.float32)
    h = jnp.dot(w1_ref[...], x, preferred_element_type=jnp.float32) + b1_ref[...]
    h = jnp.maximum(h, 0.0)                                          # ReLU
    y = jnp.dot(w2_ref[...], h, preferred_element_type=jnp.float32) + b2_ref[...]
    o_ref[...] = (x + y).astype(o_ref.dtype)


def _resblock_downsample_kernel(x_ref, w1d_ref, b1d_ref, w2_ref, b2_ref, o_ref):
    """d_in != d_out:  out = (Wd @ x + bd) + W2 @ relu(W1 @ x + b1) + b2.

    W1 and Wd are stacked host-side into one (2*d_out, d_in) matrix so the
    shared x operand is pushed through the MXU only once per tile.
    """
    d_out = w2_ref.shape[0]
    x = x_ref[...].astype(jnp.float32)
    hr = jnp.dot(w1d_ref[...], x, preferred_element_type=jnp.float32) + b1d_ref[...]
    h = jnp.maximum(hr[:d_out], 0.0)      # proj branch (pre-ReLU rows)
    r = hr[d_out:]                        # downsample residual rows
    y = jnp.dot(w2_ref[...], h, preferred_element_type=jnp.float32) + b2_ref[...]
    o_ref[...] = (r + y).astype(o_ref.dtype)


# ---------------------------------------------------------------- helpers ---

def _expand_grouped_weight(w_g, groups):
    """(d_out, d_in//groups) grouped Conv1d(k=1) weight -> dense block-diag
    (d_out, d_in), built with a single block_diag op (no Python update-slice
    loop in the XLA graph).

    TODO(synk): for large channel counts / many groups the dense expansion
    wastes groups x MXU work & VMEM; a per-group dot inside the kernel would
    be preferable at scale.
    """
    if groups == 1:
        return w_g
    blocks = jnp.split(w_g, groups, axis=0)          # groups x (d_out/g, d_in/g)
    return block_diag(*blocks)                       # (d_out, d_in)


def _pick_tile_n(n_pad, d_in, d_out, vmem_budget_bytes=20 * 1024 * 1024):
    """Pick the tile width TN (multiple of 128) along the packed B*L axis.

    Constraints:
      (a) TN evenly divides n_pad (n_pad is already a multiple of 128),
      (b) double-buffered f32 in+out tiles stay under a conservative budget
          sized for v7x's 64 MiB VMEM / 32 MiB scoped default,
      (c) at least 2 grid steps when possible so v7x's two TensorCores
          (grid axis marked 'parallel') both get work.
    """
    m = n_pad // 128
    bytes_per_128 = 2 * (d_in + d_out) * 128 * 4     # double-buffered in + out
    t_budget = max(1, vmem_budget_bytes // bytes_per_128)
    t_cap = min(t_budget, m if m < 2 else max(1, m // 2))
    best = 1
    for t in range(1, t_cap + 1):
        if m % t == 0:
            best = t
    return best * 128


# ---------------------------------------------------------------- wrapper ---

def residual_block_forward(x, params, groups=1):
    """x: (B, d_in, L)  (channels-first, as PyTorch Conv1d expects)."""
    B, d_in, L = x.shape
    d_out = params["w1"].shape[0]
    out_dtype = x.dtype

    # ---- lane-dense layout: pack batch*spatial along the lane axis ----------
    n = B * L
    n_pad = ((n + 127) // 128) * 128                 # full-lane (unmasked) stores
    x_flat = jnp.transpose(x, (1, 0, 2)).reshape(d_in, n)
    if n_pad != n:
        x_flat = jnp.pad(x_flat, ((0, 0), (0, n_pad - n)))

    tn = _pick_tile_n(n_pad, d_in, d_out)
    n_steps = n_pad // tn

    # ---- host-side weight prep ---------------------------------------------
    w1 = _expand_grouped_weight(params["w1"], groups)          # (d_out, d_in)
    w2 = _expand_grouped_weight(params["w2"], groups)          # (d_out, d_out)
    b1 = params["b1"].reshape(d_out, 1)
    b2 = params["b2"].reshape(d_out, 1)

    x_spec = pl.BlockSpec((d_in, tn), lambda i: (0, i))
    o_spec = pl.BlockSpec((d_out, tn), lambda i: (0, i))

    # Weight/bias blocks are grid-invariant (constant index_map), so Pallas
    # does not re-DMA them between steps; they are tiny, so the default
    # buffering is left alone rather than risking pl.Buffered(1).
    def wspec(shape):
        return pl.BlockSpec(shape, lambda i: (0, 0))

    cparams = pltpu.CompilerParams(
        dimension_semantics=("parallel",),            # lets v7x split over 2 TCs
        vmem_limit_bytes=32 * 1024 * 1024,            # explicit; tiles sized for it
    )

    if d_in == d_out:
        out_flat = pl.pallas_call(
            _resblock_identity_kernel,
            out_shape=jax.ShapeDtypeStruct((d_out, n_pad), out_dtype),
            grid=(n_steps,),
            in_specs=[x_spec,
                      wspec((d_out, d_in)), wspec((d_out, 1)),
                      wspec((d_out, d_out)), wspec((d_out, 1))],
            out_specs=o_spec,
            compiler_params=cparams,
        )(x_flat, w1, b1, w2, b2)
    else:
        wd = _expand_grouped_weight(params["wd"], groups)      # (d_out, d_in)
        bd = params["bd"].reshape(d_out, 1)
        # Fuse W1 and Wd into one matmul against the shared x operand.
        w1d = jnp.concatenate([w1, wd], axis=0)                # (2*d_out, d_in)
        b1d = jnp.concatenate([b1, bd], axis=0)                # (2*d_out, 1)
        out_flat = pl.pallas_call(
            _resblock_downsample_kernel,
            out_shape=jax.ShapeDtypeStruct((d_out, n_pad), out_dtype),
            grid=(n_steps,),
            in_specs=[x_spec,
                      wspec((2 * d_out, d_in)), wspec((2 * d_out, 1)),
                      wspec((d_out, d_out)), wspec((d_out, 1))],
            out_specs=o_spec,
            compiler_params=cparams,
        )(x_flat, w1d, b1d, w2, b2)

    # ---- unpack back to (B, d_out, L) --------------------------------------
    out = out_flat[:, :n].reshape(d_out, B, L)
    return jnp.transpose(out, (1, 0, 2))


# ---------------------------------------------------- pure-JAX reference ----

def _grouped_pointwise_conv(x, w_g, b, groups):
    """Exact grouped Conv1d(kernel_size=1) semantics."""
    B, d_in, L = x.shape
    d_out = w_g.shape[0]
    xg = x.reshape(B, groups, d_in // groups, L)
    wg = w_g.reshape(groups, d_out // groups, d_in // groups)
    yg = jnp.einsum("bgil,goi->bgol", xg, wg)
    return yg.reshape(B, d_out, L) + b[None, :, None]


def reference_forward(x, params, groups=1):
    d_in = x.shape[1]
    d_out = params["w1"].shape[0]
    h = jnp.maximum(_grouped_pointwise_conv(x, params["w1"], params["b1"], groups), 0.0)
    y = _grouped_pointwise_conv(h, params["w2"], params["b2"], groups)
    if d_in == d_out:
        return x + y
    return _grouped_pointwise_conv(x, params["wd"], params["bd"], groups) + y


# ------------------------------------------------------------------- main ---

if __name__ == "__main__":
    key = jax.random.PRNGKey(0)
    keys = jax.random.split(key, 12)

    def w(k, shape, scale=0.1):
        return (scale * jax.random.normal(k, shape)).astype(jnp.float32)

    def check(name, out, ref, shape):
        assert out.shape == shape, f"{name}: shape {out.shape} != {shape}"
        err = jnp.max(jnp.abs(out - ref))
        assert jnp.allclose(out, ref, atol=1e-4, rtol=1e-4), f"{name} max abs err {err}"

    # ---- case A: d_in == d_out (identity residual), groups=1 ----
    B, L = 2, 128
    d_in = d_out = 32
    params_a = {
        "w1": w(keys[0], (d_out, d_in)),     # Conv1d(d_in, d_out, k=1) weight (squeezed)
        "b1": w(keys[1], (d_out,)),
        "w2": w(keys[2], (d_out, d_out)),
        "b2": w(keys[3], (d_out,)),
    }
    x_a = jax.random.normal(keys[4], (B, d_in, L), jnp.float32)
    out_a = jax.block_until_ready(residual_block_forward(x_a, params_a, groups=1))
    check("case A", out_a, reference_forward(x_a, params_a, groups=1), (B, d_out, L))

    # ---- case B: d_in != d_out (downsample residual), groups=2 ----
    d_in, d_out, groups = 32, 64, 2
    params_b = {
        "w1": w(keys[5], (d_out, d_in // groups)),
        "b1": w(keys[6], (d_out,)),
        "w2": w(keys[7], (d_out, d_out // groups)),
        "b2": w(keys[8], (d_out,)),
        "wd": w(keys[9], (d_out, d_in // groups)),
        "bd": w(keys[10], (d_out,)),
    }
    x_b = jax.random.normal(keys[4], (B, d_in, L), jnp.float32)
    out_b = jax.block_until_ready(residual_block_forward(x_b, params_b, groups=groups))
    check("case B", out_b, reference_forward(x_b, params_b, groups=groups), (B, d_out, L))

    # ---- case C: identity residual, grouped, spatial NOT a multiple of 128 ----
    B, L = 3, 100
    d_in = d_out = 32
    groups = 4
    params_c = {
        "w1": w(keys[0], (d_out, d_in // groups)),
        "b1": w(keys[1], (d_out,)),
        "w2": w(keys[2], (d_out, d_out // groups)),
        "b2": w(keys[3], (d_out,)),
    }
    x_c = jax.random.normal(keys[11], (B, d_in, L), jnp.float32)
    out_c = jax.block_until_ready(residual_block_forward(x_c, params_c, groups=groups))
    check("case C", out_c, reference_forward(x_c, params_c, groups=groups), (B, d_out, L))

    print("KERNEL_OK")
</pallas_src>

<mosaic_0001>
module attributes {stable_mosaic.version = 11 : i64} {
  func.func @_resblock_identity_kernel(%arg0: i32, %arg1: memref<32x128xf32, #tpu.memory_space<vmem>>, %arg2: memref<32x32xf32, #tpu.memory_space<vmem>>, %arg3: memref<32x1xf32, #tpu.memory_space<vmem>>, %arg4: memref<32x32xf32, #tpu.memory_space<vmem>>, %arg5: memref<32x1xf32, #tpu.memory_space<vmem>>, %arg6: memref<32x128xf32, #tpu.memory_space<vmem>>) attributes {dimension_semantics = [#tpu.dimension_semantics<parallel>], iteration_bounds = array<i64: 2>, scalar_prefetch = 0 : i64, scratch_operands = 0 : i64, tpu.core_type = #tpu.core_type<tc>, window_params = [{transform_indices = @transform_0, window_bounds = array<i64: 32, 128>}, {pipeline_mode = #tpu.pipeline_mode<synchronous>, transform_indices = @transform_1, window_bounds = array<i64: 32, 32>}, {pipeline_mode = #tpu.pipeline_mode<synchronous>, transform_indices = @transform_2, window_bounds = array<i64: 32, 1>}, {pipeline_mode = #tpu.pipeline_mode<synchronous>, transform_indices = @transform_3, window_bounds = array<i64: 32, 32>}, {pipeline_mode = #tpu.pipeline_mode<synchronous>, transform_indices = @transform_4, window_bounds = array<i64: 32, 1>}, {transform_indices = @transform_5, window_bounds = array<i64: 32, 128>}]} {
    %c0 = arith.constant 0 : index
    %c0_0 = arith.constant 0 : index
    %0 = vector.load %arg1[%c0, %c0_0] : memref<32x128xf32, #tpu.memory_space<vmem>>, vector<32x128xf32>
    %c0_1 = arith.constant 0 : index
    %c0_2 = arith.constant 0 : index
    %1 = vector.load %arg2[%c0_1, %c0_2] : memref<32x32xf32, #tpu.memory_space<vmem>>, vector<32x32xf32>
    %cst = arith.constant dense<0.000000e+00> : vector<32x128xf32>
    %2 = tpu.matmul %1, %0, %cst {dimension_numbers = #tpu.dot_dimension_numbers<[1], [0], [0], [1], [0, 0, 1, 1], [], []>} : vector<32x32xf32>, vector<32x128xf32>, vector<32x128xf32> -> vector<32x128xf32>
    %c0_3 = arith.constant 0 : index
    %c0_4 = arith.constant 0 : index
    %3 = vector.load %arg3[%c0_3, %c0_4] : memref<32x1xf32, #tpu.memory_space<vmem>>, vector<32x1xf32>
    %4 = vector.broadcast %3 : vector<32x1xf32> to vector<32x128xf32>
    %5 = arith.addf %2, %4 : vector<32x128xf32>
    %cst_5 = arith.constant 0.000000e+00 : f32
    %6 = vector.broadcast %cst_5 : f32 to vector<32x128xf32>
    %7 = arith.maximumf %5, %6 : vector<32x128xf32>
    %c0_6 = arith.constant 0 : index
    %c0_7 = arith.constant 0 : index
    %8 = vector.load %arg4[%c0_6, %c0_7] : memref<32x32xf32, #tpu.memory_space<vmem>>, vector<32x32xf32>
    %cst_8 = arith.constant dense<0.000000e+00> : vector<32x128xf32>
    %9 = tpu.matmul %8, %7, %cst_8 {dimension_numbers = #tpu.dot_dimension_numbers<[1], [0], [0], [1], [0, 0, 1, 1], [], []>} : vector<32x32xf32>, vector<32x128xf32>, vector<32x128xf32> -> vector<32x128xf32>
    %c0_9 = arith.constant 0 : index
    %c0_10 = arith.constant 0 : index
    %10 = vector.load %arg5[%c0_9, %c0_10] : memref<32x1xf32, #tpu.memory_space<vmem>>, vector<32x1xf32>
    %11 = vector.broadcast %10 : vector<32x1xf32> to vector<32x128xf32>
    %12 = arith.addf %9, %11 : vector<32x128xf32>
    %13 = arith.addf %0, %12 : vector<32x128xf32>
    %c0_11 = arith.constant 0 : index
    %c0_12 = arith.constant 0 : index
    %14 = vector.load %arg6[%c0_11, %c0_12] : memref<32x128xf32, #tpu.memory_space<vmem>>, vector<32x128xf32>
    tpu.vector_store %arg6[%c0_11, %c0_12], %13 {strides = array<i32>} : memref<32x128xf32, #tpu.memory_space<vmem>>, vector<32x128xf32>,
    return
  }
  func.func @transform_0(%arg0: i32) -> (i32, i32) {
    %c0_i32 = arith.constant 0 : i32
    %c0_i32_0 = arith.constant 0 : i32
    return %c0_i32, %arg0 : i32, i32
  }
  func.func @transform_1(%arg0: i32) -> (i32, i32) {
    %c0_i32 = arith.constant 0 : i32
    %c0_i32_0 = arith.constant 0 : i32
    %c0_i32_1 = arith.constant 0 : i32
    return %c0_i32, %c0_i32_0 : i32, i32
  }
  func.func @transform_2(%arg0: i32) -> (i32, i32) {
    %c0_i32 = arith.constant 0 : i32
    %c0_i32_0 = arith.constant 0 : i32
    %c0_i32_1 = arith.constant 0 : i32
    return %c0_i32, %c0_i32_0 : i32, i32
  }
  func.func @transform_3(%arg0: i32) -> (i32, i32) {
    %c0_i32 = arith.constant 0 : i32
    %c0_i32_0 = arith.constant 0 : i32
    %c0_i32_1 = arith.constant 0 : i32
    return %c0_i32, %c0_i32_0 : i32, i32
  }
  func.func @transform_4(%arg0: i32) -> (i32, i32) {
    %c0_i32 = arith.constant 0 : i32
    %c0_i32_0 = arith.constant 0 : i32
    %c0_i32_1 = arith.constant 0 : i32
    return %c0_i32, %c0_i32_0 : i32, i32
  }
  func.func @transform_5(%arg0: i32) -> (i32, i32) {
    %c0_i32 = arith.constant 0 : i32
    %c0_i32_0 = arith.constant 0 : i32
    return %c0_i32, %arg0 : i32, i32
  }
}

</mosaic_0001>

<bundles_post_ra>
// kernel: tpu_custom_call.1
= control target key start
LH: loop header
LB: loop body
LE: loop exit
PB: predicated region body
PF: predicated region fallthrough
CT: control target
= control target key end

     0   :  { %10 = vsyncpa [#allocation4], 0  ;;  %s1181_s0 = inlined_call_operand.vmem [shape: f32[32,256], index: 0, kind: input, shape index: {}]   ;;  %s1182_s1 = inlined_call_operand.hbm [shape: f32[32,32], index: 1, kind: input, shape index: {}]   ;;  %s1183_s2 = inlined_call_operand.vmem [shape: f32[32,1], index: 2, kind: input, shape index: {}]   ;;  %s1184_s3 = inlined_call_operand.hbm [shape: f32[32,32], index: 3, kind: input, shape index: {}]   ;;  %s1185_s4 = inlined_call_operand.vmem [shape: f32[32,1], index: 4, kind: input, shape index: {}]   ;;  %s1186_s5 = inlined_call_operand.hbm [shape: f32[32,256], index: 5, kind: output, shape index: {}]  }
   0x1   :  { %11 = vsyncpa [#allocation7], 0 }
   0x2   :  { %12 = vsyncpa [#allocation5], 0 }
   0x3   :  { %14 = vsyncpa [#allocation5 + $0x1], 0  ;;  %s967_s18 = smov 0   ;;  %s969_s19 = smov 0  }
   0x4   :  { %s971_s20 = smov 0   ;;  %s973_s21 = smov 0  }
   0x5 LB: > { %s988_s22 = sadd.s32 4294967295, %s926_s21   ;;  %s670_s23 = sadd.s32 4294967294, %s926_s21   ;;  %s926_s21 = sphi %s973_s21, %s1203_s21   ;;  %s922_s20 = sphi %s971_s20, %s1202_s20   ;;  %s918_s19 = sphi %s969_s19, %s1201_s19   ;;  %s914_s18 = sphi %s967_s18, %s1200_s18  }
   0x6   : > { %s992_s24 = sadd.s32 1, %s926_s21   ;;  %s27_s25 = sadd.s32 1, %s922_s20 }
   0x7   : > { %s24_s26 = ssub.s32 %s926_s21, %s992_s24  ;;  %p34_p0 = scmp.ne.s32.totalorder %s922_s20, %s918_s19 }
   0x8   : > { %p25_p1 = scmp.eq.s32.totalorder %s24_s26, 0  ;;  %p35_p2 = scmp.eq.s32.totalorder %s926_s21, 0 }
   0x9   : > { %p148_p3 = scmp.eq.s32.totalorder %s988_s22, 1  ;;  %p153_p4 = scmp.ne.s32.totalorder %s918_s19, %s914_s18 }
   0xa   : > { %s1004_s27 = scalar_select %p25_p1, %s922_s20, %s27_s25  }
   0xb   : > { %p1006_p5 = por %p35_p2, %p34_p0  ;;  %p1010_p6 = por %p148_p3, %p34_p0 }
   0xc   : > { %p154_p7 = scmp.eq.s32.totalorder %s670_s23, 1  ;;  %p671_p8 = scmp.ge.s32.totalorder %s926_s21, 1 }
   0xd   : > { %s1190_s29 = scalar_select %p1010_p6, 1, 0 }
   0xe   : > { %p161_p9 = scmp.lt.s32.totalorder %s926_s21, 3  ;;  %p1016_p10 = por %p154_p7, %p153_p4 }
   0xf   : > { %p1187_p11 = scmp.eq.s32.totalorder %s988_s22, 0  ;;  %s928_s7 = smov [#allocation3]  }
  0x10   : > { %s1191_s30 = scalar_select %p1016_p10, 1, 0 }
  0x11   : > { %p1021_p12 = pnand %p671_p8, %p161_p9  ;;  %s173_s8 = sshll.u32 %s928_s7, 4  ;;  %s174_s8 = int_to_ptr.vmem [resolvable:$true] %s173_s8 }
  0x12   : > { %s929_s10 = smov [#allocation6]   ;;  %s817_s12 = scalar_lea.vmem %s174_s8, 512 }
  0x13   : > { %p748_p13 = pneg %p1021_p12  ;;  %s189_s11 = sshll.u32 %s929_s10, 4  ;;  %s190_s11 = int_to_ptr.vmem [resolvable:$true] %s189_s11 }
  0x14   : > { %p818_p2 = scmp.ne.s32.totalorder %s174_s8, %s817_s12  ;;  %p825_p7 = scmp.lt.s32.totalorder %s174_s8, %s174_s8 }
  0x15   : > { %p1029_p0 = pnand %p1187_p11, %p748_p13  ;;  %p826_p8 = scmp.lt.s32.totalorder %s817_s12, %s817_s12 }
  0x17   : > { %p808_p1 = pneg %p1029_p0  ;;  %p827_p9 = por %p826_p8, %p825_p7 }
  0x19   : > { %p820_p3 = pnand %p818_p2, %p808_p1 }
  0x1b   : > { %p821_p4 = pneg %p820_p3 }
  0x1d   : > { %p828_p13 = pnand %p827_p9, %p821_p4 }
  0x1f   : > { %831 = shalt.err (!%p828_p13)
}
  0x20   : > { %s930_s13 = smov 128   ;;  %s931_s14 = smov 8  }
  0x21   : > { %751 = dma.hbm_to_vmem [thread:$0]  (!%p1029_p0), %s1182_s1, 512, %s174_s8, [#allocation4], %s930_s13, %s930_s13, %s931_s14  }
  0x22   : > { %s843_s17 = scalar_lea.vmem %s190_s11, 512  ;;  %p851_p10 = scmp.lt.s32.totalorder %s190_s11, %s190_s11 }
  0x23   : > { %p844_p11 = scmp.ne.s32.totalorder %s190_s11, %s843_s17  ;;  %p852_p6 = scmp.lt.s32.totalorder %s843_s17, %s843_s17 }
  0x25   : > { %p846_p2 = pnand %p844_p11, %p808_p1  ;;  %p853_p7 = por %p852_p6, %p851_p10 }
  0x27   : > { %p847_p3 = pneg %p846_p2 }
  0x29   : > { %p854_p4 = pnand %p853_p7, %p847_p3 }
  0x2b   : > { %857 = shalt.err (!%p854_p4)
}
  0x2c   : > { %754 = dma.hbm_to_vmem [thread:$0]  (!%p1029_p0), %s1184_s3, 512, %s190_s11, [#allocation7], %s930_s13, %s930_s13, %s931_s14  }
  0x2d   : > { %p674_p8 = scmp.ge.s32.totalorder %s926_s21, 2 }
  0x2f   : > { %202 = sbr.rel (%p674_p8) target bundleno = 58 (0x3a), region = 32 }
  0x34   : > { %205 = sbr.rel (!%p1006_p5) target bundleno = 58 (0x3a), region = 36  ;;  %s207_s26 = sand.u32 (%p1006_p5), 1, %s922_s20  }
  0x35   : > { %s676_s7 = sshll.u32 (%p1006_p5), %s926_s21, 3  ;;  %s675_s8 = sshll.u32 (%p1006_p5), %s207_s26, 5 }
  0x36   : > { %s211_s9 = scalar_lea.vmem (%p1006_p5), %s1181_s0, %s676_s7  ;;  %s209_s11 = scalar_lea.vmem (%p1006_p5), [#allocation2], %s675_s8 }
  0x37   : > { %v246_v0 = vld [vmem:[%s211_s9] sm:$0xff] (%p1006_p5)  ;;  %v248_v1 = vld [vmem:[%s211_s9 + $0x10] sm:$0xff] (%p1006_p5) }
  0x38   : > { %v250_v2 = vld [vmem:[%s211_s9 + $0x20] sm:$0xff] (%p1006_p5)  ;;  %247 = vst [vmem:[%s209_s11] sm:$0xff] (%p1006_p5), %v246_v0  ;;  %249 = vst [vmem:[%s209_s11 + $0x8] sm:$0xff] (%p1006_p5), %v248_v1  ;;  %v252_v3 = vld [vmem:[%s211_s9 + $0x30] sm:$0xff] (%p1006_p5) }
  0x39   : > { %251 = vst [vmem:[%s209_s11 + $0x10] sm:$0xff] %v250_v2  ;;  %253 = vst [vmem:[%s209_s11 + $0x18] sm:$0xff] %v252_v3 }
  0x3a PF: > { %262 = sbr.rel (%p1021_p12) target bundleno = 504 (0x1f8), region = 74  ;;  %s265_s28 = sand.u32 (!%p1021_p12), 1, %s918_s19  }
  0x3b   : > { %s1066_s13 = sshll.u32 (!%p1021_p12), %s265_s28, 5  ;;  %p1194_p5 = scmp.eq.s32.totalorder (!%p1021_p12), %s988_s22, 0 }
  0x3c   : > { %s267_s14 = scalar_lea.vmem (!%p1021_p12), [#allocation2], %s1066_s13 }
  0x3f   : > { %901 = dma.done.wait (%p1194_p5), [#allocation4], 512   ;;  %p1195_p6 = pmov %p1194_p5 }
  0x40   : > { %p1196_p10 = pmov %p1194_p5 }
  0x41   : > { %903 = vsyncadd (%p1195_p6), [#allocation4], 4294966784 }
  0x42   : > { %905 = dma.done.wait (%p1196_p10), [#allocation7], 512   ;;  %p1197_p11 = pmov %p1194_p5 }
  0x43   : > { %v932_v4 = vmov 0   ;;  %vm332_vm0 = vcmask 261120   ;;  %v1077_v5 = vld [vmem:[%s267_s14 + $0x18] sm:$0xff]  ;;  %v1079_v6 = vld [vmem:[%s267_s14 + $0x10] sm:$0xff]  ;;  %v304_v7 = vld [vmem:[#allocation3] sm:$0xff]  ;;  %s299_s16 = scalar_lea.vmem [#allocation8], %s1066_s13 }
  0x44   : > { %907 = vsyncadd (%p1197_p11), [#allocation7], 4294966784  ;;  %804 = vset.pattern.permute.xlu0 %v932_v4  ;;  %805 = vset.pattern.permute.xlu1 %v932_v4  ;;  %v1083_v8 = vld [vmem:[%s267_s14 + $0x8] sm:$0xff]  ;;  %v311_v9 = vld [vmem:[%s1183_s2 + $0x18] sm:$0xff]  ;;  %s580_s17 = sshll.u32 %s299_s16, 4  ;;  %s691_s23 = sshll.u32 %s988_s22, 7  ;;  %s1129_s17 = int_to_ptr.vmem [resolvable:$true] %s580_s17 }
  0x45   : > { %710 = vmatprep.subr.mxu0 %v1077_v5  ;;  %718 = vmatprep.mubr.msk.f32.mxu0 %vm332_vm0, %v304_v7  ;;  %v309_v10 = vld [vmem:[%s1183_s2 + $0x8] sm:$0xff]  ;;  %v1094_v11 = vld [vmem:[%s267_s14] sm:$0xff]  ;;  %v310_v12 = vld [vmem:[%s1183_s2 + $0x10] sm:$0xff]  ;;  %s1135_s26 = scalar_lea.hbm %s1186_s5, %s691_s23  ;;  %s1140_s22 = scalar_lea.sflag [#allocation5], %s265_s28 }
  0x46   : > { %711 = vmatpush3.msra.mxu0 %v1077_v5  ;;  %329 = vperm.xlu0 %804, %v311_v9   ;;  %v308_v13 = vld [vmem:[%s1183_s2] sm:$0xff]  ;;  %v305_v14 = vld [vmem:[#allocation3 + $0x8] sm:$0xff]  ;;  %v306_v15 = vld [vmem:[#allocation3 + $0x10] sm:$0xff]  ;;  %s858_s7 = scalar_lea.vmem %s1129_s17, 512  ;;  %p1198_p0 = scmp.ne.s32.totalorder %s1190_s29, 0 }
  0x47   : > { %712 = vmatprep.subr.mxu0 %v1079_v6  ;;  %319 = vperm.xlu1 %805, %v309_v10   ;;  %v438_v16 = vld [vmem:[%s1185_s4] sm:$0xff]  ;;  %v439_v17 = vld [vmem:[%s1185_s4 + $0x8] sm:$0xff]  ;;  %v307_v18 = vld [vmem:[#allocation3 + $0x18] sm:$0xff]  ;;  %p859_p12 = scmp.ne.s32.totalorder %s1129_s17, %s858_s7  ;;  %s933_s8 = smov [#allocation8]  }
  0x48   : > { %713 = vmatpush3.msra.mxu0 %v1079_v6  ;;  %v440_v19 = vld [vmem:[%s1185_s4 + $0x10] sm:$0xff]  ;;  %v441_v20 = vld [vmem:[%s1185_s4 + $0x18] sm:$0xff]  ;;  %v434_v21 = vld [vmem:[#allocation6] sm:$0xff]  ;;  %s862_s10 = sshll.u32 %s933_s8, 4  ;;  %s863_s10 = int_to_ptr.vmem [resolvable:$false] %s862_s10 }
  0x49   : > { %714 = vmatprep.subr.mxu0 %v1083_v8  ;;  %732 = vmatprep.mubr.msk.f32.mxu1 %vm332_vm0, %v434_v21  ;;  %v435_v38 = vld [vmem:[#allocation6 + $0x8] sm:$0xff]  ;;  %v436_v39 = vld [vmem:[#allocation6 + $0x10] sm:$0xff]  ;;  %v437_v40 = vld [vmem:[#allocation6 + $0x18] sm:$0xff]  ;;  %p860_p1 = pnand %p859_p12, %p1198_p0  ;;  %s864_s12 = scalar_lea.vmem %s863_s10, 1024 }
  0x4a   : > { %715 = vmatpush3.msra.mxu0 %v1083_v8  ;;  %324 = vperm.xlu0 %804, %v310_v12   ;;  %p865_p13 = scmp.lt.s32.totalorder %s1129_s17, %s863_s10  ;;  %p866_p2 = scmp.lt.s32.totalorder %s864_s12, %s858_s7 }
  0x4b   : > { %716 = vmatprep.subr.mxu0 %v1094_v11  ;;  %314 = vperm.xlu1 %805, %v308_v13   ;;  %p861_p9 = pneg %p860_p1 }
  0x4c   : > { %717 = vmatpush3.msra.mxu0 %v1094_v11  ;;  %p867_p3 = por %p866_p2, %p865_p13 }
  0x4d   : > { %719 = vmatmul.mubr.msk.f32.vlgmr.msra.gmra.mxu0 %vm332_vm0, %v305_v14 }
  0x4e   : > { %721 = vmatprep.mubr.msk.f32.mxu0 %vm332_vm0, %v306_v15  ;;  %444 = vperm.xlu0 %804, %v438_v16   ;;  %p868_p7 = pnand %p867_p3, %p861_p9 }
  0x4f   : > { %449 = vperm.xlu1 %805, %v439_v17  }
  0x51   : > { %722 = vmatmul.mubr.msk.f32.gmra.mxu0 %vm332_vm0, %v307_v18 }
  0x52   : > { %454 = vperm.xlu0 %804, %v440_v19  }
  0x53   : > { %459 = vperm.xlu1 %805, %v441_v20  }
  0xc1   : > { %v330_v22 = vpop.permute.xlu0 %329 }
  0xc2   : > { %v320_v24 = vpop.permute.xlu1 %319 }
  0xc5   : > { %v325_v28 = vpop.permute.xlu0 %324 }
  0xc6   : > { %v315_v33 = vpop.permute.xlu1 %314 }
  0xc9   : > { %v445_v42 = vpop.permute.xlu0 %444 }
  0xca   : > { %v450_v41 = vpop.permute.xlu1 %449 }
  0xcd   : > { %v455_v52 = vpop.permute.xlu0 %454 }
  0xce   : > { %v460_v48 = vpop.permute.xlu1 %459 }
 0x10d   : > { %v720_v23 = vpop.f32.mrf.mxu0 }
 0x10e   : > { %v417_v30 = vadd.f32 %v720_v23, %v320_v24 }
 0x10f   : > { %v411_v25 = vpop.f32.mrf.mxu0 }
 0x110   : > { %v412_v34 = vadd.f32 %v411_v25, %v315_v33  ;;  %v431_v36 = vmax.f32 %v417_v30, 0.0 }
 0x111   : > { %v723_v26 = vpop.f32.mrf.mxu0 }
 0x112   : > { %v427_v27 = vadd.f32 %v723_v26, %v330_v22  ;;  %v430_v37 = vmax.f32 %v412_v34, 0.0 }
 0x113   : > { %v421_v29 = vpop.f32.mrf.mxu0 }
 0x114   : > { %v433_v31 = vmax.f32 %v427_v27, 0.0  ;;  %v422_v32 = vadd.f32 %v421_v29, %v325_v28 }
 0x116   : > { %v432_v35 = vmax.f32 %v422_v32, 0.0  ;;  %724 = vmatprep.subr.mxu1 %v433_v31 }
 0x117   : > { %725 = vmatpush3.msra.mxu1 %v433_v31 }
 0x118   : > { %726 = vmatprep.subr.mxu1 %v432_v35 }
 0x119   : > { %727 = vmatpush3.msra.mxu1 %v432_v35 }
 0x11a   : > { %728 = vmatprep.subr.mxu1 %v431_v36 }
 0x11b   : > { %729 = vmatpush3.msra.mxu1 %v431_v36 }
 0x11c   : > { %730 = vmatprep.subr.mxu1 %v430_v37 }
 0x11d   : > { %731 = vmatpush3.msra.mxu1 %v430_v37 }
 0x11e   : > { %733 = vmatmul.mubr.msk.f32.vlgmr.msra.gmra.mxu1 %vm332_vm0, %v435_v38 }
 0x11f   : > { %735 = vmatprep.mubr.msk.f32.mxu1 %vm332_vm0, %v436_v39 }
 0x122   : > { %736 = vmatmul.mubr.msk.f32.gmra.mxu1 %vm332_vm0, %v437_v40 }
 0x1de   : > { %v734_v43 = vpop.f32.mrf.mxu1 }
 0x1df   : > { %v546_v44 = vadd.f32 %v734_v43, %v450_v41 }
 0x1e0   : > { %v540_v45 = vpop.f32.mrf.mxu1 }
 0x1e1   : > { %v560_v46 = vadd.f32 %v546_v44, %v1083_v8  ;;  %v541_v47 = vadd.f32 %v540_v45, %v445_v42 }
 0x1e2   : > { %v737_v49 = vpop.f32.mrf.mxu1 }
 0x1e3   : > { %564 = vst [vmem:[%s299_s16 + $0x8] sm:$0xff] %v560_v46  ;;  %v559_v50 = vadd.f32 %v541_v47, %v1094_v11  ;;  %v556_v51 = vadd.f32 %v737_v49, %v460_v48 }
 0x1e4   : > { %v550_v53 = vpop.f32.mrf.mxu1 }
 0x1e5   : > { %563 = vst [vmem:[%s299_s16] sm:$0xff] %v559_v50  ;;  %v562_v54 = vadd.f32 %v556_v51, %v1077_v5  ;;  %v551_v55 = vadd.f32 %v550_v53, %v455_v52 }
 0x1e7   : > { %566 = vst [vmem:[%s299_s16 + $0x18] sm:$0xff] %v562_v54  ;;  %v561_v56 = vadd.f32 %v551_v55, %v1079_v6 }
 0x1e9   : > { %565 = vst [vmem:[%s299_s16 + $0x10] sm:$0xff] %v561_v56 }
 0x1ea   : > { %871 = shalt.err (!%p868_p7)
}
 0x1eb   : > { %s872_s28 = scalar_lea.hbm %s1135_s26, 512  ;;  %s876_s14 = scalar_lea.hbm %s1186_s5, 1024 }
 0x1ec   : > { %p873_p4 = scmp.ne.s32.totalorder %s1135_s26, %s872_s28  ;;  %p877_p10 = scmp.lt.s32.totalorder %s1135_s26, %s1186_s5 }
 0x1ed   : > { %p878_p11 = scmp.lt.s32.totalorder %s876_s14, %s872_s28 }
 0x1ee   : > { %p874_p5 = pnand %p873_p4, %p1198_p0 }
 0x1ef   : > { %p879_p12 = por %p878_p11, %p877_p10 }
 0x1f0   : > { %p875_p6 = pneg %p874_p5 }
 0x1f2   : > { %p880_p1 = pnand %p879_p12, %p875_p6 }
 0x1f4   : > { %883 = shalt.err (!%p880_p1)
}
 0x1f5   : > { %s934_s16 = smov 128   ;;  %s935_s23 = smov 256  }
 0x1f6   : > { %s936_s13 = smov 8  }
 0x1f7   : > { %746 = dma.vmem_to_hbm [thread:$0]  (%p1198_p0), %s1129_s17, 512, %s1135_s26, %s1140_s22, %s934_s16, %s935_s23, %s936_s13  }
 0x1f8 PF: > { %s595_s25 = sand.u32 1, %s914_s18   ;;  %p1199_p9 = scmp.ne.s32.totalorder %s1191_s30, 0 }
 0x1f9   : > { %s596_s7 = scalar_lea.sflag [#allocation5], %s595_s25 }
 0x1fa   : > { %p756_p13 = pnand %p674_p8, %p1199_p9 }
 0x1fc   : > { %p757_p2 = pneg %p756_p13 }
 0x1fe   : > { %909 = dma.done.wait (%p757_p2), %s596_s7, 512  }
 0x1ff   : > { %911 = vsyncadd (%p757_p2), %s596_s7, 4294966784  ;;  %p17_p3 = scmp.ge.s32.totalorder %s992_s24, 4   ;;  %s1200_s18 = smov %s918_s19 }
 0x200   : > { %s1201_s19 = smov %s922_s20  ;;  %s1202_s20 = smov %s1004_s27 }
 0x201   : > { %s1203_s21 = smov %s992_s24  ;;  %19 = sbr.rel (!%p17_p3) target bundleno = 5 (0x5), region = 127 }
 0x206   :  { %601 = vsyncpa [#allocation4], 1 }
 0x207   :  { %603 = vsyncpa [#allocation4 + $0x1], 1 }
 0x208   :  { %604 = vsyncpa [#allocation7], 1 }
 0x209   :  { %605 = vsyncpa [#allocation5], 1 }
 0x20a   :  { %607 = vsyncpa [#allocation5 + $0x1], 1 }

</bundles_post_ra>
